<compile_context>
chip_gen: v7x
topology: tpu7x:2x2x1
jax: 0.10.0
libtpu: 0.0.40
codegen_flags: <defaults>
</compile_context>

<pallas_src>
import functools
import math

import jax
import jax.numpy as jnp
import numpy as np
from jax.experimental import pallas as pl
from jax.experimental.pallas import tpu as pltpu

# Large finite negative used for masked scores and the running-max init.
# Identical result to -inf for every row with >= 1 unmasked key, and avoids
# exp(-inf - (-inf)) NaNs.
_MASK_VALUE = -0.7 * float(jnp.finfo(jnp.float32).max)


def _flash_attention_kernel(*refs, scale, mask_mode, compute_dtype):
    if mask_mode in ("shared", "dense"):
        q_ref, k_ref, v_ref, m_ref, o_ref, m_sc, l_sc, acc_sc = refs
    else:
        q_ref, k_ref, v_ref, o_ref, m_sc, l_sc, acc_sc = refs
        m_ref = None

    qi = pl.program_id(1)
    kv = pl.program_id(2)
    block_q = q_ref.shape[1]
    block_k = k_ref.shape[1]

    @pl.when(kv == 0)
    def _init():
        m_sc[...] = jnp.full_like(m_sc, _MASK_VALUE)
        l_sc[...] = jnp.zeros_like(l_sc)
        acc_sc[...] = jnp.zeros_like(acc_sc)

    def _body():
        # Fold 1/sqrt(D) into q: (G,tq,D) elements instead of (G,tq,tk) scores.
        q = (q_ref[...] * scale).astype(compute_dtype)     # (G, tq, D)
        k = k_ref[...].astype(compute_dtype)                # (G, tk, D)
        v = v_ref[...]                                       # (G, tk, D)

        # Contract D directly (batched dot_general, no k transpose), f32 acc.
        s = jnp.einsum("gqd,gkd->gqk", q, k,
                       preferred_element_type=jnp.float32)   # (G, tq, tk)

        if mask_mode == "shared":
            s = jnp.where((m_ref[...] == 0)[None], _MASK_VALUE, s)  # int8 compare
        elif mask_mode == "dense":
            s = jnp.where(m_ref[...] == 0, _MASK_VALUE, s)          # int8 compare
        elif mask_mode == "causal":
            # In-kernel mask: no (S,S) mask DMA at all.
            row = qi * block_q + jax.lax.broadcasted_iota(
                jnp.int32, (block_q, block_k), 0)
            col = kv * block_k + jax.lax.broadcasted_iota(
                jnp.int32, (block_q, block_k), 1)
            s = jnp.where((col <= row)[None], s, _MASK_VALUE)

        # ---- online softmax update (f32 statistics) -------------------------
        # TODO(synk): for D<=64 on v6e/v7x the single EUP can become the
        # bottleneck; a bf16 exp would double its throughput (not on v5e).
        m_prev = m_sc[...]                                   # (G, tq, 1)
        m_new = jnp.maximum(m_prev, jnp.max(s, axis=-1, keepdims=True))
        alpha = jnp.exp(m_prev - m_new)
        p = jnp.exp(s - m_new)                               # (G, tq, tk) f32
        l_sc[...] = alpha * l_sc[...] + jnp.sum(p, axis=-1, keepdims=True)
        acc_sc[...] = alpha * acc_sc[...] + jnp.einsum(
            "gqk,gkd->gqd", p.astype(compute_dtype), v.astype(compute_dtype),
            preferred_element_type=jnp.float32)
        m_sc[...] = m_new

    if mask_mode == "causal":
        # Skip fully-masked kv tiles (first kv column of the tile is past the
        # last q row of the tile).  Combined with the clamped K/V index_map the
        # skipped steps also issue no new DMA.
        pl.when(kv * block_k <= qi * block_q + block_q - 1)(_body)
    else:
        _body()

    @pl.when(kv == pl.num_programs(2) - 1)
    def _finalize():
        l = l_sc[...]
        inv = pl.reciprocal(l, approx=True)        # EUP slot
        inv = inv * (2.0 - l * inv)                # one Newton step -> ~exact
        o_ref[...] = (acc_sc[...] * inv).astype(o_ref.dtype)


def _largest_divisor_leq(n, cap):
    cap = int(max(1, min(n, cap)))
    for d in range(cap, 0, -1):
        if n % d == 0:
            return d
    return 1


def _tile_size(dim, preferred, granule):
    """Largest multiple of `granule` dividing `dim` and <= preferred, or the
    full extent (a full-dimension block is always a legal BlockSpec)."""
    if dim <= preferred:
        return dim
    t = (preferred // granule) * granule
    while t >= granule:
        if dim % t == 0:
            return t
        t -= granule
    return dim


def _vmem_capacity_bytes():
    try:
        return int(pltpu.get_tpu_info().vmem_capacity_bytes)
    except Exception:
        return 64 << 20   # conservative fallback (v7x physical per-TC VMEM)


def self_attention(q, k, v, mask=None, *, bf16_matmul=True):
    """Pallas flash-attention equivalent of SelfAttention.forward.

    q, k, v: [B, H, S, D].  Optional mask (0 = masked) of shape (S, S) or
    broadcastable to [B, H, S, S].  Returns [B, H, S, D] in q's dtype.
    """
    B, H, S, D = q.shape
    BH = B * H
    scale = 1.0 / math.sqrt(float(D))

    in_dtype = jnp.dtype(q.dtype)
    itemsize = in_dtype.itemsize
    compute_dtype = (jnp.bfloat16
                     if (bf16_matmul and in_dtype == jnp.float32)
                     else q.dtype)

    # ---- generation-aware VMEM budget --------------------------------------
    phys_vmem = _vmem_capacity_bytes()
    if phys_vmem >= (96 << 20):          # v5e / v6e: 128 MiB physical
        vmem_limit = 80 << 20
    else:                                 # v7x: 64 MiB physical per TC
        vmem_limit = 44 << 20
    vmem_limit = int(min(vmem_limit, phys_vmem * 3 // 4))
    budget = int(vmem_limit * 0.7)        # headroom for compiler temporaries

    # ---- tiles: tq >= tk (K/V HBM traffic scales with S/tq) ----------------
    q_granule = {4: 8, 2: 16, 1: 32}.get(itemsize, 8)   # dtype-aware sublanes
    tq = _tile_size(S, 512, q_granule)
    tk = _tile_size(S, 256, 128)

    # ---- mask classification ------------------------------------------------
    mask_mode = "none"
    m_arr = None
    if mask is not None:
        mask = jnp.asarray(mask)
        shared = (mask.ndim == 2
                  or (mask.ndim == 4 and mask.shape[0] == 1 and mask.shape[1] == 1))
        if shared:
            m2 = mask if mask.ndim == 2 else mask[0, 0]
            is_causal = False
            try:  # only possible on concrete (non-traced) masks
                m_np = np.asarray(jax.device_get(m2)) != 0
                is_causal = bool(np.array_equal(
                    m_np, np.tril(np.ones((S, S), dtype=bool))))
            except Exception:
                is_causal = False
            if is_causal:
                mask_mode = "causal"       # generated in-kernel, tiles skipped
            else:
                mask_mode = "shared"       # single (S,S) int8 mask, shared over heads
                m_arr = (m2 != 0).astype(jnp.int8)
        else:
            # TODO(synk): (B,1,S,S)/(1,H,S,S) masks are replicated across heads
            # here; packing to 1 bit/key or per-row valid lengths would cut the
            # mask DMA by 8x+.
            mask_mode = "dense"
            m_arr = (jnp.broadcast_to(mask, (B, H, S, S)) != 0).astype(jnp.int8)
            m_arr = m_arr.reshape(BH, S, S)

    # ---- group size G from an explicit VMEM estimate ------------------------
    def vmem_estimate(g):
        io = 2 * g * (2 * tq * D + 2 * tk * D) * itemsize   # q+out, k+v (x2 buf)
        if mask_mode == "dense":
            io += 2 * g * tq * tk                            # int8 mask (x2 buf)
        elif mask_mode == "shared":
            io += 2 * tq * tk
        scratch = g * tq * (2 + D) * 4                       # m, l, acc (f32)
        score_tmps = 3 * g * tq * tk * 4                     # s / p / casts live
        return io + scratch + score_tmps

    G = 1
    for cand in range(1, BH + 1):
        if BH % cand == 0 and vmem_estimate(cand) <= budget:
            G = cand

    # v7x megacore: keep the product of the two parallel grid extents >= 2.
    num_q_tiles = S // tq
    while G > 1 and (BH // G) * num_q_tiles < 2:
        G = _largest_divisor_leq(BH, G - 1)

    grid = (BH // G, S // tq, S // tk)

    qf = q.reshape(BH, S, D)
    kf = k.reshape(BH, S, D)
    vf = v.reshape(BH, S, D)

    q_spec = pl.BlockSpec((G, tq, D), lambda g, qi, ki: (g, qi, 0))
    o_spec = pl.BlockSpec((G, tq, D), lambda g, qi, ki: (g, qi, 0))

    if mask_mode == "causal":
        # Clamp the kv block index for fully-masked tiles: the pipeline sees a
        # repeated block index (no new K/V DMA) and the kernel body is gated off.
        def kv_index(g, qi, ki):
            return (g, jnp.minimum(ki, (qi * tq + tq - 1) // tk), 0)
        kv_spec = pl.BlockSpec((G, tk, D), kv_index)
    else:
        kv_spec = pl.BlockSpec((G, tk, D), lambda g, qi, ki: (g, ki, 0))

    in_specs = [q_spec, kv_spec, kv_spec]
    operands = [qf, kf, vf]
    if mask_mode == "shared":
        in_specs.append(pl.BlockSpec((tq, tk), lambda g, qi, ki: (qi, ki)))
        operands.append(m_arr)
    elif mask_mode == "dense":
        in_specs.append(pl.BlockSpec((G, tq, tk), lambda g, qi, ki: (g, qi, ki)))
        operands.append(m_arr)

    kernel = functools.partial(_flash_attention_kernel, scale=scale,
                               mask_mode=mask_mode, compute_dtype=compute_dtype)

    out = pl.pallas_call(
        kernel,
        out_shape=jax.ShapeDtypeStruct((BH, S, D), q.dtype),
        grid_spec=pltpu.PrefetchScalarGridSpec(
            num_scalar_prefetch=0,
            grid=grid,
            in_specs=in_specs,
            out_specs=o_spec,
            scratch_shapes=[
                pltpu.VMEM((G, tq, 1), jnp.float32),   # running max
                pltpu.VMEM((G, tq, 1), jnp.float32),   # running denominator
                pltpu.VMEM((G, tq, D), jnp.float32),   # output accumulator
            ],
        ),
        compiler_params=pltpu.CompilerParams(
            dimension_semantics=("parallel", "parallel", "arbitrary"),
            vmem_limit_bytes=vmem_limit,
        ),
    )(*operands)

    return out.reshape(B, H, S, D)


def _reference(q, k, v, mask=None):
    D = q.shape[-1]
    s = jnp.einsum("bhqd,bhkd->bhqk", q.astype(jnp.float32),
                   k.astype(jnp.float32)) / jnp.sqrt(jnp.float32(D))
    if mask is not None:
        s = jnp.where(mask == 0, -jnp.inf, s)
    p = jax.nn.softmax(s, axis=-1)
    return jnp.einsum("bhqk,bhkd->bhqd", p, v.astype(jnp.float32))


if __name__ == "__main__":
    B, H, S, D = 2, 4, 8, 32
    key = jax.random.PRNGKey(0)
    kq, kk, kv_, km = jax.random.split(key, 4)

    q = jax.random.normal(kq, (B, H, S, D), dtype=jnp.float32)
    k = jax.random.normal(kk, (B, H, S, D), dtype=jnp.float32)
    v = jax.random.normal(kv_, (B, H, S, D), dtype=jnp.float32)

    tol_bf16 = dict(atol=5e-2, rtol=5e-2)   # default path: bf16 MXU matmuls
    tol_f32 = dict(atol=1e-2, rtol=1e-2)    # exact-f32 path

    # 1) no mask (bf16 MXU path)
    out = self_attention(q, k, v)
    jax.block_until_ready(out)
    assert jnp.allclose(out, _reference(q, k, v), **tol_bf16), "no-mask mismatch"

    # 2) no mask, exact f32 matmuls
    out32 = self_attention(q, k, v, bf16_matmul=False)
    jax.block_until_ready(out32)
    assert jnp.allclose(out32, _reference(q, k, v), **tol_f32), "f32 mismatch"

    # 3) causal mask ([1,1,S,S]) -> in-kernel iota mask (no mask DMA)
    causal = jnp.tril(jnp.ones((S, S), dtype=jnp.int32))[None, None]
    out_c = self_attention(q, k, v, causal)
    jax.block_until_ready(out_c)
    assert jnp.allclose(out_c, _reference(q, k, v, causal), **tol_bf16), \
        "causal mismatch"

    # 4) shared non-causal mask -> single (S,S) int8 DMA path
    shared = jnp.ones((S, S), dtype=jnp.int32).at[:, S - 2:].set(0)[None, None]
    out_s = self_attention(q, k, v, shared)
    jax.block_until_ready(out_s)
    assert jnp.allclose(out_s, _reference(q, k, v, shared), **tol_bf16), \
        "shared-mask mismatch"

    # 5) arbitrary per-(batch, head) mask (diag kept -> no fully-masked rows)
    rand = (jax.random.uniform(km, (B, H, S, S)) > 0.3).astype(jnp.int32)
    eye = jnp.eye(S, dtype=jnp.int32)[None, None]
    pad_mask = jnp.maximum(rand, eye)
    out_m = self_attention(q, k, v, pad_mask)
    jax.block_until_ready(out_m)
    assert jnp.allclose(out_m, _reference(q, k, v, pad_mask), **tol_bf16), \
        "per-head mask mismatch"

    # 6) bf16 inputs
    qb, kb, vb = (x.astype(jnp.bfloat16) for x in (q, k, v))
    out_b = self_attention(qb, kb, vb)
    jax.block_until_ready(out_b)
    assert jnp.allclose(out_b.astype(jnp.float32), _reference(qb, kb, vb),
                        atol=5e-2, rtol=5e-2), "bf16 mismatch"

    # 7) larger causal case: exercises tq=512 / tk=256 tiling, in-kernel causal
    #    mask and fully-masked kv-tile skipping.
    B2, H2, S2, D2 = 1, 2, 1024, 32
    k2q, k2k, k2v = jax.random.split(jax.random.PRNGKey(1), 3)
    q2 = jax.random.normal(k2q, (B2, H2, S2, D2), dtype=jnp.float32)
    k2 = jax.random.normal(k2k, (B2, H2, S2, D2), dtype=jnp.float32)
    v2 = jax.random.normal(k2v, (B2, H2, S2, D2), dtype=jnp.float32)
    causal2 = jnp.tril(jnp.ones((S2, S2), dtype=jnp.int32))[None, None]
    out2 = self_attention(q2, k2, v2, causal2)
    jax.block_until_ready(out2)
    assert jnp.allclose(out2, _reference(q2, k2, v2, causal2), **tol_bf16), \
        "large causal mismatch"

    print("KERNEL_OK")
</pallas_src>

<mosaic_0001>
module attributes {stable_mosaic.version = 11 : i64} {
  func.func @_flash_attention_kernel(%arg0: i32, %arg1: i32, %arg2: i32, %arg3: memref<4x8x32xf32, #tpu.memory_space<vmem>>, %arg4: memref<4x8x32xf32, #tpu.memory_space<vmem>>, %arg5: memref<4x8x32xf32, #tpu.memory_space<vmem>>, %arg6: memref<4x8x32xf32, #tpu.memory_space<vmem>>, %arg7: memref<4x8x1xf32, #tpu.memory_space<vmem>>, %arg8: memref<4x8x1xf32, #tpu.memory_space<vmem>>, %arg9: memref<4x8x32xf32, #tpu.memory_space<vmem>>) attributes {dimension_semantics = [#tpu.dimension_semantics<parallel>, #tpu.dimension_semantics<parallel>, #tpu.dimension_semantics<arbitrary>], iteration_bounds = array<i64: 2, 1, 1>, scalar_prefetch = 0 : i64, scratch_operands = 3 : i64, tpu.core_type = #tpu.core_type<tc>, window_params = [{transform_indices = @transform_0, window_bounds = array<i64: 4, 8, 32>}, {transform_indices = @transform_1, window_bounds = array<i64: 4, 8, 32>}, {transform_indices = @transform_2, window_bounds = array<i64: 4, 8, 32>}, {transform_indices = @transform_3, window_bounds = array<i64: 4, 8, 32>}]} {
    %c0_i32 = arith.constant 0 : i32
    %0 = arith.cmpi eq, %arg2, %c0_i32 : i32
    %1 = arith.extui %0 : i1 to i32
    %c0_i32_0 = arith.constant 0 : i32
    %2 = arith.cmpi ne, %1, %c0_i32_0 : i32
    scf.if %2 {
      %cst_33 = arith.constant -2.38197633E+38 : f32
      %38 = vector.broadcast %cst_33 : f32 to vector<4x8x1xf32>
      %c0_34 = arith.constant 0 : index
      %c0_35 = arith.constant 0 : index
      %c0_36 = arith.constant 0 : index
      %39 = vector.load %arg7[%c0_34, %c0_35, %c0_36] : memref<4x8x1xf32, #tpu.memory_space<vmem>>, vector<4x8x1xf32>
      tpu.vector_store %arg7[%c0_34, %c0_35, %c0_36], %38 {strides = array<i32>} : memref<4x8x1xf32, #tpu.memory_space<vmem>>, vector<4x8x1xf32>,
      %cst_37 = arith.constant 0.000000e+00 : f32
      %40 = vector.broadcast %cst_37 : f32 to vector<4x8x1xf32>
      %c0_38 = arith.constant 0 : index
      %c0_39 = arith.constant 0 : index
      %c0_40 = arith.constant 0 : index
      %41 = vector.load %arg8[%c0_38, %c0_39, %c0_40] : memref<4x8x1xf32, #tpu.memory_space<vmem>>, vector<4x8x1xf32>
      tpu.vector_store %arg8[%c0_38, %c0_39, %c0_40], %40 {strides = array<i32>} : memref<4x8x1xf32, #tpu.memory_space<vmem>>, vector<4x8x1xf32>,
      %cst_41 = arith.constant 0.000000e+00 : f32
      %42 = vector.broadcast %cst_41 : f32 to vector<4x8x32xf32>
      %c0_42 = arith.constant 0 : index
      %c0_43 = arith.constant 0 : index
      %c0_44 = arith.constant 0 : index
      %43 = vector.load %arg9[%c0_42, %c0_43, %c0_44] : memref<4x8x32xf32, #tpu.memory_space<vmem>>, vector<4x8x32xf32>
      tpu.vector_store %arg9[%c0_42, %c0_43, %c0_44], %42 {strides = array<i32>} : memref<4x8x32xf32, #tpu.memory_space<vmem>>, vector<4x8x32xf32>,
    } else {
    }
    %c0 = arith.constant 0 : index
    %c0_1 = arith.constant 0 : index
    %c0_2 = arith.constant 0 : index
    %3 = vector.load %arg3[%c0, %c0_1, %c0_2] : memref<4x8x32xf32, #tpu.memory_space<vmem>>, vector<4x8x32xf32>
    %cst = arith.constant 0.176776692 : f32
    %4 = vector.broadcast %cst : f32 to vector<4x8x32xf32>
    %5 = arith.mulf %3, %4 : vector<4x8x32xf32>
    %6 = arith.truncf %5 : vector<4x8x32xf32> to vector<4x8x32xbf16>
    %c0_3 = arith.constant 0 : index
    %c0_4 = arith.constant 0 : index
    %c0_5 = arith.constant 0 : index
    %7 = vector.load %arg4[%c0_3, %c0_4, %c0_5] : memref<4x8x32xf32, #tpu.memory_space<vmem>>, vector<4x8x32xf32>
    %8 = arith.truncf %7 : vector<4x8x32xf32> to vector<4x8x32xbf16>
    %c0_6 = arith.constant 0 : index
    %c0_7 = arith.constant 0 : index
    %c0_8 = arith.constant 0 : index
    %9 = vector.load %arg5[%c0_6, %c0_7, %c0_8] : memref<4x8x32xf32, #tpu.memory_space<vmem>>, vector<4x8x32xf32>
    "tpu.trace_start"() <{level = 10 : i32, message = "gqd,gkd->gqk"}> : () -> ()
    %cst_9 = arith.constant dense<0.000000e+00> : vector<4x8x8xf32>
    %10 = tpu.matmul %6, %8, %cst_9 {dimension_numbers = #tpu.dot_dimension_numbers<[2], [2], [1], [1], [0, 0, 0, 1, 1, 1], [0], [0]>} : vector<4x8x32xbf16>, vector<4x8x32xbf16>, vector<4x8x8xf32> -> vector<4x8x8xf32>
    "tpu.trace_stop"() : () -> ()
    %c0_10 = arith.constant 0 : index
    %c0_11 = arith.constant 0 : index
    %c0_12 = arith.constant 0 : index
    %11 = vector.load %arg7[%c0_10, %c0_11, %c0_12] : memref<4x8x1xf32, #tpu.memory_space<vmem>>, vector<4x8x1xf32>
    %cst_13 = arith.constant dense<0xFF800000> : vector<4x8xf32>
    %12 = vector.multi_reduction <maximumf>, %10, %cst_13 [2] : vector<4x8x8xf32> to vector<4x8xf32>
    %13 = vector.shape_cast %12 : vector<4x8xf32> to vector<4x8x1xf32>
    %14 = arith.maximumf %11, %13 : vector<4x8x1xf32>
    %15 = arith.subf %11, %14 : vector<4x8x1xf32>
    %16 = math.exp %15 : vector<4x8x1xf32>
    %17 = vector.broadcast %14 : vector<4x8x1xf32> to vector<4x8x8xf32>
    %18 = arith.subf %10, %17 : vector<4x8x8xf32>
    %19 = math.exp %18 : vector<4x8x8xf32>
    %c0_14 = arith.constant 0 : index
    %c0_15 = arith.constant 0 : index
    %c0_16 = arith.constant 0 : index
    %20 = vector.load %arg8[%c0_14, %c0_15, %c0_16] : memref<4x8x1xf32, #tpu.memory_space<vmem>>, vector<4x8x1xf32>
    %21 = arith.mulf %16, %20 : vector<4x8x1xf32>
    %cst_17 = arith.constant dense<0.000000e+00> : vector<4x8xf32>
    %22 = vector.multi_reduction <add>, %19, %cst_17 [2] : vector<4x8x8xf32> to vector<4x8xf32>
    %23 = vector.shape_cast %22 : vector<4x8xf32> to vector<4x8x1xf32>
    %24 = arith.addf %21, %23 : vector<4x8x1xf32>
    %c0_18 = arith.constant 0 : index
    %c0_19 = arith.constant 0 : index
    %c0_20 = arith.constant 0 : index
    %25 = vector.load %arg8[%c0_18, %c0_19, %c0_20] : memref<4x8x1xf32, #tpu.memory_space<vmem>>, vector<4x8x1xf32>
    tpu.vector_store %arg8[%c0_18, %c0_19, %c0_20], %24 {strides = array<i32>} : memref<4x8x1xf32, #tpu.memory_space<vmem>>, vector<4x8x1xf32>,
    %c0_21 = arith.constant 0 : index
    %c0_22 = arith.constant 0 : index
    %c0_23 = arith.constant 0 : index
    %26 = vector.load %arg9[%c0_21, %c0_22, %c0_23] : memref<4x8x32xf32, #tpu.memory_space<vmem>>, vector<4x8x32xf32>
    %27 = vector.broadcast %16 : vector<4x8x1xf32> to vector<4x8x32xf32>
    %28 = arith.mulf %27, %26 : vector<4x8x32xf32>
    %29 = arith.truncf %19 : vector<4x8x8xf32> to vector<4x8x8xbf16>
    %30 = arith.truncf %9 : vector<4x8x32xf32> to vector<4x8x32xbf16>
    "tpu.trace_start"() <{level = 10 : i32, message = "gqk,gkd->gqd"}> : () -> ()
    %cst_24 = arith.constant dense<0.000000e+00> : vector<4x8x32xf32>
    %31 = tpu.matmul %29, %30, %cst_24 {dimension_numbers = #tpu.dot_dimension_numbers<[2], [1], [1], [2], [0, 0, 0, 1, 1, 2], [0], [0]>} : vector<4x8x8xbf16>, vector<4x8x32xbf16>, vector<4x8x32xf32> -> vector<4x8x32xf32>
    "tpu.trace_stop"() : () -> ()
    %32 = arith.addf %28, %31 : vector<4x8x32xf32>
    %c0_25 = arith.constant 0 : index
    %c0_26 = arith.constant 0 : index
    %c0_27 = arith.constant 0 : index
    %33 = vector.load %arg9[%c0_25, %c0_26, %c0_27] : memref<4x8x32xf32, #tpu.memory_space<vmem>>, vector<4x8x32xf32>
    tpu.vector_store %arg9[%c0_25, %c0_26, %c0_27], %32 {strides = array<i32>} : memref<4x8x32xf32, #tpu.memory_space<vmem>>, vector<4x8x32xf32>,
    %c0_28 = arith.constant 0 : index
    %c0_29 = arith.constant 0 : index
    %c0_30 = arith.constant 0 : index
    %34 = vector.load %arg7[%c0_28, %c0_29, %c0_30] : memref<4x8x1xf32, #tpu.memory_space<vmem>>, vector<4x8x1xf32>
    tpu.vector_store %arg7[%c0_28, %c0_29, %c0_30], %14 {strides = array<i32>} : memref<4x8x1xf32, #tpu.memory_space<vmem>>, vector<4x8x1xf32>,
    %c0_i32_31 = arith.constant 0 : i32
    %35 = arith.cmpi eq, %arg2, %c0_i32_31 : i32
    %36 = arith.extui %35 : i1 to i32
    %c0_i32_32 = arith.constant 0 : i32
    %37 = arith.cmpi ne, %36, %c0_i32_32 : i32
    scf.if %37 {
      %c0_33 = arith.constant 0 : index
      %c0_34 = arith.constant 0 : index
      %c0_35 = arith.constant 0 : index
      %38 = vector.load %arg8[%c0_33, %c0_34, %c0_35] : memref<4x8x1xf32, #tpu.memory_space<vmem>>, vector<4x8x1xf32>
      %39 = tpu.reciprocal %38 {approx = true} : vector<4x8x1xf32> -> vector<4x8x1xf32>
      %40 = arith.mulf %38, %39 : vector<4x8x1xf32>
      %cst_36 = arith.constant 2.000000e+00 : f32
      %41 = vector.broadcast %cst_36 : f32 to vector<4x8x1xf32>
      %42 = arith.subf %41, %40 : vector<4x8x1xf32>
      %43 = arith.mulf %39, %42 : vector<4x8x1xf32>
      %c0_37 = arith.constant 0 : index
      %c0_38 = arith.constant 0 : index
      %c0_39 = arith.constant 0 : index
      %44 = vector.load %arg9[%c0_37, %c0_38, %c0_39] : memref<4x8x32xf32, #tpu.memory_space<vmem>>, vector<4x8x32xf32>
      %45 = vector.broadcast %43 : vector<4x8x1xf32> to vector<4x8x32xf32>
      %46 = arith.mulf %44, %45 : vector<4x8x32xf32>
      %c0_40 = arith.constant 0 : index
      %c0_41 = arith.constant 0 : index
      %c0_42 = arith.constant 0 : index
      %47 = vector.load %arg6[%c0_40, %c0_41, %c0_42] : memref<4x8x32xf32, #tpu.memory_space<vmem>>, vector<4x8x32xf32>
      tpu.vector_store %arg6[%c0_40, %c0_41, %c0_42], %46 {strides = array<i32>} : memref<4x8x32xf32, #tpu.memory_space<vmem>>, vector<4x8x32xf32>,
    } else {
    }
    return
  }
  func.func @transform_0(%arg0: i32, %arg1: i32, %arg2: i32) -> (i32, i32, i32) {
    %c0_i32 = arith.constant 0 : i32
    %c0_i32_0 = arith.constant 0 : i32
    return %arg0, %arg1, %c0_i32 : i32, i32, i32
  }
  func.func @transform_1(%arg0: i32, %arg1: i32, %arg2: i32) -> (i32, i32, i32) {
    %c0_i32 = arith.constant 0 : i32
    %c0_i32_0 = arith.constant 0 : i32
    return %arg0, %arg2, %c0_i32 : i32, i32, i32
  }
  func.func @transform_2(%arg0: i32, %arg1: i32, %arg2: i32) -> (i32, i32, i32) {
    %c0_i32 = arith.constant 0 : i32
    %c0_i32_0 = arith.constant 0 : i32
    return %arg0, %arg2, %c0_i32 : i32, i32, i32
  }
  func.func @transform_3(%arg0: i32, %arg1: i32, %arg2: i32) -> (i32, i32, i32) {
    %c0_i32 = arith.constant 0 : i32
    %c0_i32_0 = arith.constant 0 : i32
    return %arg0, %arg1, %c0_i32 : i32, i32, i32
  }
}

</mosaic_0001>

<bundles_post_ra>
// kernel: tpu_custom_call.1
= control target key start
LH: loop header
LB: loop body
LE: loop exit
PB: predicated region body
PF: predicated region fallthrough
CT: control target
= control target key end

     0   :  { %s1909_s0 = inlined_call_operand.hbm [shape: f32[8,8,32], index: 0, kind: input, shape index: {}]   ;;  %s1910_s1 = inlined_call_operand.hbm [shape: f32[8,8,32], index: 1, kind: input, shape index: {}]   ;;  %s1911_s2 = inlined_call_operand.hbm [shape: f32[8,8,32], index: 2, kind: input, shape index: {}]   ;;  %s1912_s3 = inlined_call_operand.hbm [shape: f32[8,8,32], index: 3, kind: output, shape index: {}]  }
   0x1   :  { %1922 = sst [smem:[#allocation18_spill]] %s1910_s1 }
   0x2   :  { %8 = vsyncpa [#allocation6], 0 }
   0x3   :  { %10 = vsyncpa [#allocation6 + $0x1], 0 }
   0x4   :  { %11 = vsyncpa [#allocation9], 0 }
   0x5   :  { %13 = vsyncpa [#allocation9 + $0x1], 0 }
   0x6   :  { %14 = vsyncpa [#allocation7], 0 }
   0x7   :  { %16 = vsyncpa [#allocation7 + $0x1], 0  ;;  %s1475_s12 = smov 0   ;;  %s1477_s13 = smov 0  }
   0x8   :  { %s1479_s14 = smov 0   ;;  %s1481_s15 = smov 0  }
   0x9   :  { %s1483_s16 = smov 0   ;;  %s1485_s17 = smov 0  }
   0xa LB: > { %1923 = sst [smem:[#allocation15_spill]] %s1437_s16  ;;  %s1506_s18 = sadd.s32 4294967295, %s1441_s17   ;;  %s1441_s17 = sphi %s1485_s17, %s22_s17   ;;  %s1437_s16 = sphi %s1483_s16, %s1946_s16   ;;  %s1433_s15 = sphi %s1481_s15, %s1945_s15   ;;  %s1429_s14 = sphi %s1479_s14, %s1949_s14   ;;  %s1425_s13 = sphi %s1477_s13, %s1948_s13   ;;  %s1421_s12 = sphi %s1475_s12, %s1947_s12  }
   0xb   : > { %s1061_s19 = sadd.s32 4294967294, %s1441_s17   ;;  %s41_s20 = sadd.s32 1, %s1437_s16 }
   0xc   : > { %s50_s21 = sadd.s32 1, %s1429_s14  ;;  %p43_p0 = scmp.ge.s32.totalorder %s41_s20, 2 }
   0xd   : > { %p57_p1 = scmp.ne.s32.totalorder %s1429_s14, %s1425_s13  ;;  %p58_p2 = scmp.eq.s32.totalorder %s1441_s17, 0 }
   0xe   : > { %p63_p3 = scmp.ne.s32.totalorder %s1425_s13, %s1421_s12  ;;  %s1951_s20 = smov (%p43_p0, %s41_s20), 0 }
   0xf   : > { %1924 = sst [smem:[#allocation16_spill]] %s1951_s20  ;;  %p1518_p4 = por %p58_p2, %p57_p1 }
  0x10   : > { %p64_p5 = scmp.eq.s32.totalorder %s1506_s18, 0  ;;  %s45_s23 = ssub.s32 %s1437_s16, %s1951_s20 }
  0x11   : > { %p145_p6 = scmp.eq.s32.totalorder %s1506_s18, 1  ;;  %p48_p7 = scmp.eq.s32.totalorder %s45_s23, 0 }
  0x12   : > { %p1526_p8 = por %p64_p5, %p63_p3  ;;  %p151_p10 = scmp.eq.s32.totalorder %s1061_s19, 1 }
  0x13   : > { %p1530_p9 = por %p145_p6, %p57_p1  ;;  %p1181_p13 = scmp.lt.s32.totalorder %s1441_s17, 2 }
  0x14   : > { %s1926_s24 = scalar_select %p1526_p8, 1, 0 }
  0x15   : > { %s1927_s25 = scalar_select %p1530_p9, 1, 0 }
  0x16   : > { %s1535_s26 = scalar_select %p48_p7, %s1429_s14, %s50_s21  }
  0x17   : > { %p1537_p11 = por %p151_p10, %p63_p3  ;;  %s1915_s28 = sand.u32 1, %s1429_s14  }
  0x18   : > { %1928 = sst [smem:[#allocation17_spill]] %s1535_s26  ;;  %s1546_s29 = sshll.u32 %s1915_s28, 5 }
  0x19   : > { %s1929_s27 = scalar_select %p1537_p11, 1, 0 }
  0x1a   : > { %s1549_s30 = sshll.u32 %s1437_s16, 9  ;;  %p1553_p0 = pnand %p1181_p13, %p1518_p4 }
  0x1b   : > { %s193_s5 = sand.u32 1, %s1441_s17   ;;  %s1931_s1 = sld [smem:[#allocation18_spill]] }
  0x1c   : > { %s197_s9 = scalar_lea.vmem [#allocation8], %s1546_s29  ;;  %s1569_s11 = scalar_lea.sflag [#allocation9], %s193_s5 }
  0x1d   : > { %s205_s10 = sshll.u32 %s197_s9, 4  ;;  %p1575_p4 = pneg %p1553_p0  ;;  %s1566_s10 = int_to_ptr.vmem [resolvable:$true] %s205_s10 }
  0x21   : > { %s1562_s8 = scalar_lea.hbm %s1931_s1, %s1549_s30  ;;  %s1270_s6 = scalar_lea.hbm %s1931_s1, 1024 }
  0x22   : > { %s1265_s19 = scalar_lea.hbm %s1562_s8, 512  ;;  %p1271_p7 = scmp.lt.u32.totalorder %s1562_s8, %s1931_s1 }
  0x23   : > { %p1266_p3 = scmp.ne.s32.totalorder %s1562_s8, %s1265_s19  ;;  %p1272_p10 = scmp.lt.u32.totalorder %s1270_s6, %s1265_s19 }
  0x24   : > { %p1274_p12 = scmp.lt.u32.totalorder %s1265_s19, %s1562_s8 }
  0x25   : > { %p1268_p5 = pnand %p1575_p4, %p1266_p3  ;;  %p1273_p13 = por %p1272_p10, %p1271_p7 }
  0x27   : > { %p1269_p6 = pneg %p1268_p5  ;;  %p1275_p1 = por %p1274_p12, %p1273_p13 }
  0x29   : > { %p1276_p2 = pnand %p1275_p1, %p1269_p6 }
  0x2b   : > { %1279 = shalt.err (!%p1276_p2)
}
  0x2c   : > { %s1280_s5 = scalar_lea.vmem %s1566_s10, 512  ;;  %s1443_s22 = smov [#allocation8]  }
  0x2d   : > { %p1281_p3 = scmp.ne.s32.totalorder %s1566_s10, %s1280_s5  ;;  %s1285_s23 = sshll.u32 %s1443_s22, 4  ;;  %s1286_s23 = int_to_ptr.vmem [resolvable:$false] %s1285_s23 }
  0x2e   : > { %s1287_s7 = scalar_lea.vmem %s1286_s23, 1024  ;;  %p1288_p9 = scmp.lt.s32.totalorder %s1566_s10, %s1286_s23 }
  0x2f   : > { %p1283_p5 = pnand %p1281_p3, %p1575_p4  ;;  %p1289_p8 = scmp.lt.s32.totalorder %s1287_s7, %s1280_s5 }
  0x31   : > { %p1284_p11 = pneg %p1283_p5  ;;  %p1290_p7 = por %p1289_p8, %p1288_p9 }
  0x33   : > { %p1291_p10 = pnand %p1290_p7, %p1284_p11 }
  0x35   : > { %1294 = shalt.err (!%p1291_p10)
}
  0x36   : > { %s1916_s19 = smov 128   ;;  %s1918_s6 = smov 8  }
  0x37   : > { %1173 = dma.hbm_to_vmem [thread:$0]  (!%p1553_p0), %s1562_s8, 512, %s1566_s10, %s1569_s11, %s1916_s19, %s1916_s19, %s1918_s6  }
  0x38   : > { %p1933_p8 = scmp.lt.s32.totalorder %s1441_s17, 3  ;;  %p1934_p9 = scmp.ge.s32.totalorder %s1441_s17, 1 }
  0x39   : > { %s1614_s23 = scalar_lea.hbm %s1909_s0, %s1549_s30  ;;  %s175_s7 = scalar_lea.vmem [#allocation5], %s1546_s29 }
  0x3a   : > { %p1606_p11 = pnand %p1934_p9, %p1933_p8  ;;  %s183_s28 = sshll.u32 %s175_s7, 4  ;;  %s1617_s28 = int_to_ptr.vmem [resolvable:$true] %s183_s28 }
  0x3b   : > { %s1623_s19 = scalar_lea.hbm %s1911_s2, %s1549_s30  ;;  %s1936_s6 = sand.u32 1, %s1429_s14  }
  0x3c   : > { %s1935_s9 = scalar_select %p1606_p11, 1, 0 }
  0x3d   : > { %s1627_s1 = scalar_lea.sflag [#allocation6], %s1936_s6  ;;  %s1295_s20 = scalar_lea.hbm %s1614_s23, 512 }
  0x3e   : > { %p1296_p12 = scmp.ne.s32.totalorder %s1614_s23, %s1295_s20  ;;  %s1300_s16 = scalar_lea.hbm %s1909_s0, 1024 }
  0x3f   : > { %p1301_p6 = scmp.lt.u32.totalorder %s1614_s23, %s1909_s0  ;;  %p1302_p13 = scmp.lt.u32.totalorder %s1300_s16, %s1295_s20 }
  0x40   : > { %p1298_p1 = pnand %p1296_p12, %p1575_p4  ;;  %p1304_p5 = scmp.lt.u32.totalorder %s1295_s20, %s1614_s23 }
  0x41   : > { %p1303_p3 = por %p1302_p13, %p1301_p6 }
  0x42   : > { %p1299_p2 = pneg %p1298_p1 }
  0x43   : > { %p1305_p7 = por %p1304_p5, %p1303_p3 }
  0x45   : > { %p1306_p10 = pnand %p1305_p7, %p1299_p2 }
  0x47   : > { %1309 = shalt.err (!%p1306_p10)
}
  0x48   : > { %s1310_s30 = scalar_lea.vmem %s1617_s28, 512  ;;  %s1446_s6 = smov [#allocation5]  }
  0x49   : > { %p1311_p8 = scmp.ne.s32.totalorder %s1617_s28, %s1310_s30  ;;  %s1315_s8 = sshll.u32 %s1446_s6, 4  ;;  %s1316_s8 = int_to_ptr.vmem [resolvable:$false] %s1315_s8 }
  0x4a   : > { %s1317_s26 = scalar_lea.vmem %s1316_s8, 1024  ;;  %p1318_p1 = scmp.lt.s32.totalorder %s1617_s28, %s1316_s8 }
  0x4b   : > { %p1313_p9 = pnand %p1311_p8, %p1575_p4  ;;  %p1319_p11 = scmp.lt.s32.totalorder %s1317_s26, %s1310_s30 }
  0x4d   : > { %p1314_p12 = pneg %p1313_p9  ;;  %p1320_p6 = por %p1319_p11, %p1318_p1 }
  0x4f   : > { %p1321_p13 = pnand %p1320_p6, %p1314_p12 }
  0x51   : > { %1324 = shalt.err (!%p1321_p13)
}
  0x52   : > { %s1937_s16 = smov 8   ;;  %s1938_s20 = smov 128  }
  0x53   : > { %1170 = dma.hbm_to_vmem [thread:$0]  (!%p1553_p0), %s1614_s23, 512, %s1617_s28, %s1627_s1, %s1938_s20, %s1938_s20, %s1937_s16  }
  0x54   : > { %s219_s10 = scalar_lea.vmem [#allocation10], %s1546_s29  ;;  %s1325_s22 = scalar_lea.hbm %s1623_s19, 512 }
  0x55   : > { %s227_s5 = sshll.u32 %s219_s10, 4  ;;  %p1326_p11 = scmp.ne.s32.totalorder %s1623_s19, %s1325_s22  ;;  %s1655_s5 = int_to_ptr.vmem [resolvable:$true] %s227_s5 }
  0x56   : > { %s1330_s6 = scalar_lea.hbm %s1911_s2, 1024  ;;  %p1331_p5 = scmp.lt.u32.totalorder %s1623_s19, %s1911_s2 }
  0x57   : > { %p1328_p2 = pnand %p1326_p11, %p1575_p4  ;;  %p1332_p7 = scmp.lt.u32.totalorder %s1330_s6, %s1325_s22 }
  0x58   : > { %p1334_p8 = scmp.lt.u32.totalorder %s1325_s22, %s1623_s19 }
  0x59   : > { %p1329_p3 = pneg %p1328_p2  ;;  %p1333_p10 = por %p1332_p7, %p1331_p5 }
  0x5b   : > { %p1335_p9 = por %p1334_p8, %p1333_p10 }
  0x5d   : > { %p1336_p12 = pnand %p1335_p9, %p1329_p3 }
  0x5f   : > { %1339 = shalt.err (!%p1336_p12)
}
  0x60   : > { %s1340_s1 = scalar_lea.vmem %s1655_s5, 512  ;;  %s1447_s28 = smov [#allocation10]  }
  0x61   : > { %p1341_p1 = scmp.ne.s32.totalorder %s1655_s5, %s1340_s1  ;;  %s1345_s29 = sshll.u32 %s1447_s28, 4  ;;  %s1346_s29 = int_to_ptr.vmem [resolvable:$false] %s1345_s29 }
  0x62   : > { %s1347_s23 = scalar_lea.vmem %s1346_s29, 1024  ;;  %p1348_p11 = scmp.lt.s32.totalorder %s1655_s5, %s1346_s29 }
  0x63   : > { %p1343_p6 = pnand %p1341_p1, %p1575_p4  ;;  %p1349_p2 = scmp.lt.s32.totalorder %s1347_s23, %s1340_s1 }
  0x65   : > { %p1344_p13 = pneg %p1343_p6  ;;  %p1350_p5 = por %p1349_p2, %p1348_p11 }
  0x67   : > { %p1351_p7 = pnand %p1350_p5, %p1344_p13 }
  0x69   : > { %1354 = shalt.err (!%p1351_p7)
}
  0x6a   : > { %1176 = dma.hbm_to_vmem [thread:$0]  (!%p1553_p0), %s1623_s19, 512, %s1655_s5, %s1569_s11, %s1938_s20, %s1938_s20, %s1937_s16  }
  0x6b   : > { %p1939_p4 = scmp.ne.s32.totalorder %s1935_s9, 0 }
  0x6c   : > { %s1685_s21 = sand.u32 (!%p1939_p4), 1, %s1425_s13   ;;  %p1940_p3 = scmp.ne.s32.totalorder (!%p1939_p4), %s1926_s24, 0 }
  0x6d   : > { %239 = sbr.rel (%p1939_p4) target bundleno = 958 (0x3be), region = 32  ;;  %s1688_s10 = sshll.u32 (!%p1939_p4), %s1685_s21, 5 }
  0x6e   : > { %s242_s4 = scalar_lea.sflag (!%p1939_p4), [#allocation6], %s1685_s21  ;;  %s1692_s22 = scalar_lea.vmem (!%p1939_p4), [#allocation5], %s1688_s10 }
  0x74   : > { %1408 = dma.done.wait (%p1940_p3), %s242_s4, 512  }
  0x75   : > { %1410 = vsyncadd (%p1940_p3), %s242_s4, 4294966784  ;;  %s250_s11 = sand.u32 1, %s1506_s18   ;;  %s254_s9 = scalar_lea.vmem [#allocation8], %s1688_s10 }
  0x76   : > { %s251_s19 = scalar_lea.sflag [#allocation9], %s250_s11 }
  0x77   : > { %1412 = dma.done.wait (%p1940_p3), %s251_s19, 1024  }
  0x78   : > { %1414 = vsyncadd (%p1940_p3), %s251_s19, 4294966272  ;;  %vm314_vm0 = vcmask 261120   ;;  %v1448_v0 = vmov 0.0   ;;  %vm1449_vm1 = vmmov 0   ;;  %v331_v1 = vld [vmem:[%s254_s9] sm:$0xff]  ;;  %v332_v2 = vld [vmem:[%s254_s9 + $0x8] sm:$0xff] }
  0x79   : > { %1111 = vmatprep.subr.bf16.mxu0 %v1448_v0  ;;  %315 = vst.msk [vmem:[#allocation4] sm:$0xff] %vm314_vm0, %v1448_v0  ;;  %316 = vst.msk [vmem:[#allocation4 + $0x8] sm:$0xff] %vm314_vm0, %v1448_v0  ;;  %1117 = vmatprep.subr.bf16.mxu1 %v1448_v0  ;;  %v319_v3 = vld [vmem:[%s1692_s22] sm:$0xff]  ;;  %v335_v4 = vpack.c.bf16 %v331_v1, %v331_v1  ;;  %v336_v5 = vpack.c.bf16 %v332_v2, %v332_v2  ;;  %v320_v6 = vld [vmem:[%s1692_s22 + $0x8] sm:$0xff]  ;;  %vm305_vm2 = vcmask 7168   ;;  %vm532_vm3 = vcmask 64512  }
  0x7a   : > { %317 = vst.msk [vmem:[#allocation4 + $0x10] sm:$0xff] %vm314_vm0, %v1448_v0  ;;  %318 = vst.msk [vmem:[#allocation4 + $0x18] sm:$0xff] %vm314_vm0, %v1448_v0  ;;  %1113 = vmatprep.mubr.msk.bf16.mxu0 %vm1449_vm1, %v1448_v0  ;;  %1119 = vmatprep.mubr.msk.bf16.mxu1 %vm1449_vm1, %v1448_v0  ;;  %v333_v7 = vld [vmem:[%s254_s9 + $0x10] sm:$0xff]  ;;  %v334_v8 = vld [vmem:[%s254_s9 + $0x18] sm:$0xff]  ;;  %v323_v11 = vmul.f32 0.17677669, %v319_v3 }
  0x7b   : > { %v348_v9 = vsel %vm314_vm0, %v335_v4, 0  ;;  %v394_v10 = vsel %vm314_vm0, %v336_v5, 0  ;;  %v324_v12 = vmul.f32 0.17677669, %v320_v6  ;;  %v337_v13 = vpack.c.bf16 %v333_v7, %v333_v7  ;;  %v321_v17 = vld [vmem:[%s1692_s22 + $0x10] sm:$0xff]  ;;  %v322_v18 = vld [vmem:[%s1692_s22 + $0x18] sm:$0xff] }
  0x7c   : > { %1112 = vmatpush3.bf16.xpose.msra.mxu0 %v348_v9  ;;  %1118 = vmatpush3.bf16.xpose.msra.mxu1 %v394_v10  ;;  %v338_v14 = vpack.c.bf16 %v334_v8, %v334_v8  ;;  %v327_v15 = vpack.c.bf16 %v323_v11, %v323_v11  ;;  %v325_v21 = vmul.f32 0.17677669, %v321_v17  ;;  %v326_v22 = vmul.f32 0.17677669, %v322_v18  ;;  %310 = vst.msk [vmem:[#allocation3] sm:$0xff] %vm305_vm2, %v1448_v0  ;;  %s263_s18 = scalar_lea.vmem [#allocation10], %s1688_s10 }
  0x7d   : > { %1123 = vmatprep.subr.bf16.mxu0 %v1448_v0  ;;  %1129 = vmatprep.subr.bf16.mxu1 %v1448_v0  ;;  %v328_v16 = vpack.c.bf16 %v324_v12, %v324_v12  ;;  %v440_v19 = vsel %vm314_vm0, %v337_v13, 0  ;;  %v1450_v25 = vmov -2.3819763e+38   ;;  %311 = vst.msk [vmem:[#allocation3 + $0x8] sm:$0xff] %vm305_vm2, %v1448_v0  ;;  %312 = vst.msk [vmem:[#allocation3 + $0x10] sm:$0xff] %vm305_vm2, %v1448_v0  ;;  %v1451_v46 = vmov 0  }
  0x7e   : > { %v486_v20 = vsel %vm314_vm0, %v338_v14, 0  ;;  %v329_v23 = vpack.c.bf16 %v325_v21, %v325_v21  ;;  %v330_v24 = vpack.c.bf16 %v326_v22, %v326_v22  ;;  %306 = vst.msk [vmem:[#allocation2] sm:$0xff] %vm305_vm2, %v1450_v25  ;;  %307 = vst.msk [vmem:[#allocation2 + $0x8] sm:$0xff] %vm305_vm2, %v1450_v25  ;;  %1239 = vset.pattern.permute.xlu0 %v1451_v46  ;;  %1240 = vset.pattern.permute.xlu1 %v1451_v46  ;;  %v339_v62 = vld [vmem:[%s263_s18] sm:$0xff]  ;;  %vm661_vm4 = vcmask 1043456   ;;  %v340_v3 = vld [vmem:[%s263_s18 + $0x8] sm:$0xff] }
  0x7f   : > { %308 = vst.msk [vmem:[#allocation2 + $0x10] sm:$0xff] %vm305_vm2, %v1450_v25  ;;  %309 = vst.msk [vmem:[#allocation2 + $0x18] sm:$0xff] %vm305_vm2, %v1450_v25  ;;  %v654_v63 = vpack.c.bf16 %v339_v62, %v339_v62  ;;  %v655_v4 = vpack.c.bf16 %v340_v3, %v340_v3  ;;  %v341_v6 = vld [vmem:[%s263_s18 + $0x10] sm:$0xff]  ;;  %v342_v9 = vld [vmem:[%s263_s18 + $0x18] sm:$0xff]  ;;  %s295_s24 = scalar_lea.vmem [#allocation11], %s1688_s10  ;;  %s1094_s20 = sshll.u32 %s1433_s15, 9 }
  0x80   : > { %313 = vst.msk [vmem:[#allocation3 + $0x18] sm:$0xff] %vm305_vm2, %v1448_v0  ;;  %v656_v7 = vpack.c.bf16 %v341_v6, %v341_v6  ;;  %v657_v10 = vpack.c.bf16 %v342_v9, %v342_v9  ;;  %s925_s16 = sshll.u32 %s295_s24, 4  ;;  %s1859_s30 = scalar_lea.hbm %s1912_s3, %s1094_s20  ;;  %s1853_s16 = int_to_ptr.vmem [resolvable:$true] %s925_s16 }
  0x81   : > { %v663_v2 = vsel %vm661_vm4, %v654_v63, 0  ;;  %v709_v5 = vsel %vm661_vm4, %v655_v4, 0  ;;  %s911_s6 = scalar_lea.sflag [#allocation7], %s1685_s21  ;;  %s1355_s8 = scalar_lea.vmem %s1853_s16, 512 }
  0x82   : > { %v755_v8 = vsel %vm661_vm4, %v656_v7, 0  ;;  %v801_v11 = vsel %vm661_vm4, %v657_v10, 0  ;;  %p1356_p0 = scmp.ne.s32.totalorder %s1853_s16, %s1355_s8  ;;  %p1941_p10 = scmp.ne.s32.totalorder %s1927_s25, 0 }
  0x83   : > { %1114 = vmatmul.mubr.msk.bf16.vlgmr.msra.gmra.mrb[0].mxu0 %vm314_vm0, %v327_v15  ;;  %1120 = vmatmul.mubr.msk.bf16.vlgmr.msra.gmra.mrb[0].mxu1 %vm314_vm0, %v328_v16  ;;  %s1452_s15 = smov [#allocation11]  }
  0x84   : > { %1124 = vmatpush3.bf16.xpose.msra.mxu0 %v440_v19  ;;  %1130 = vmatpush3.bf16.xpose.msra.mxu1 %v486_v20  ;;  %v594_v46 = vld [vmem:[#allocation3 + $0x8] sm:$0xff]  ;;  %p1357_p8 = pnand %p1356_p0, %p1941_p10  ;;  %s1359_s26 = sshll.u32 %s1452_s15, 4  ;;  %s1360_s26 = int_to_ptr.vmem [resolvable:$false] %s1359_s26 }
  0x85   : > { %1125 = vmatprep.mubr.msk.bf16.mxu0 %vm1449_vm1, %v1448_v0  ;;  %1131 = vmatprep.mubr.msk.bf16.mxu1 %vm1449_vm1, %v1448_v0  ;;  %v1770_v47 = vld [vmem:[#allocation2] sm:$0xff]  ;;  %v1775_v50 = vld [vmem:[#allocation2 + $0x8] sm:$0xff]  ;;  %s1361_s1 = scalar_lea.vmem %s1360_s26, 1024  ;;  %p1362_p12 = scmp.lt.s32.totalorder %s1853_s16, %s1360_s26 }
  0x86   : > { %1135 = vmatprep.subr.bf16.mxu0 %v1448_v0  ;;  %1141 = vmatprep.subr.bf16.mxu1 %v1448_v0  ;;  %v1785_v54 = vld [vmem:[#allocation2 + $0x10] sm:$0xff]  ;;  %v1795_v58 = vld [vmem:[#allocation2 + $0x18] sm:$0xff]  ;;  %p1358_p9 = pneg %p1357_p8  ;;  %p1363_p1 = scmp.lt.s32.totalorder %s1361_s1, %s1355_s8 }
  0x88   : > { %p1364_p6 = por %p1363_p1, %p1362_p12 }
  0x8a   : > { %p1365_p13 = pnand %p1364_p6, %p1358_p9 }
  0x8b   : > { %1126 = vmatmul.mubr.msk.bf16.vlgmr.msra.gmra.mrb[4].mxu0 %vm314_vm0, %v329_v23  ;;  %1132 = vmatmul.mubr.msk.bf16.vlgmr.msra.gmra.mrb[4].mxu1 %vm314_vm0, %v330_v24 }
  0x8c   : > { %1137 = vmatprep.mubr.msk.bf16.mxu0 %vm1449_vm1, %v1448_v0  ;;  %1143 = vmatprep.mubr.msk.bf16.mxu1 %vm1449_vm1, %v1448_v0 }
  0x8d   : > { %1136 = vmatpush3.bf16.msra.mxu0 %v663_v2  ;;  %1142 = vmatpush3.bf16.msra.mxu1 %v709_v5 }
  0x8e   : > { %1147 = vmatprep.subr.bf16.mxu0 %v1448_v0  ;;  %1153 = vmatprep.subr.bf16.mxu1 %v1448_v0 }
 0x156   : > { %v1754_v26 = vpop.f32.mrb[0].mxu0  ;;  %v1756_v27 = vpop.f32.mrb[0].mxu1 }
 0x157   : > { %v1115_v28 = vpop.f32.mrb[1].mxu0  ;;  %v533_v29 = vsel %vm532_vm3, %v1754_v26, -inf  ;;  %v1121_v30 = vpop.f32.mrb[1].mxu1  ;;  %v536_v35 = vsel %vm532_vm3, %v1756_v27, -inf }
 0x158   : > { %534 = vmax.xlane.f32.xlu0 %v533_v29  ;;  %v387_v31 = vpop.f32.mrb[2].mxu0  ;;  %v433_v32 = vpop.f32.mrb[2].mxu1 }
 0x159   : > { %v1116_v33 = vpop.f32.mrb[3].mxu0  ;;  %v1122_v34 = vpop.f32.mrb[3].mxu1 }
 0x15c   : > { %537 = vmax.xlane.f32.xlu0 %v536_v35 }
 0x15e   : > { %v1762_v36 = vpop.f32.mrb[4].mxu0  ;;  %v1764_v37 = vpop.f32.mrb[4].mxu1 }
 0x15f   : > { %v1127_v38 = vpop.f32.mrb[5].mxu0  ;;  %v539_v39 = vsel %vm532_vm3, %v1762_v36, -inf  ;;  %v1133_v40 = vpop.f32.mrb[5].mxu1  ;;  %v542_v45 = vsel %vm532_vm3, %v1764_v37, -inf }
 0x160   : > { %540 = vmax.xlane.f32.xlu1 %v539_v39  ;;  %v479_v41 = vpop.f32.mrb[6].mxu0  ;;  %v525_v42 = vpop.f32.mrb[6].mxu1 }
 0x161   : > { %v1128_v43 = vpop.f32.mrb[7].mxu0  ;;  %v1134_v44 = vpop.f32.mrb[7].mxu1 }
 0x162   : > { %v593_v43 = vld [vmem:[#allocation3] sm:$0xff] }
 0x164   : > { %543 = vmax.xlane.f32.xlu1 %v542_v45 }
 0x1e5   : > { %v535_v48 = vpop.xlane.xlu0 %534 }
 0x1e6   : > { %v1773_v49 = vmax.f32 %v1770_v47, %v535_v48 }
 0x1e8   : > { %v549_v51 = vsub.f32 %v1770_v47, %v1773_v49  ;;  %851 = vst.msk [vmem:[#allocation2] sm:$0xff] %vm305_vm2, %v1773_v49  ;;  %563 = vperm.xlu0 %1239, %v1773_v49  }
 0x1e9   : > { %v538_v52 = vpop.xlane.xlu0 %537 }
 0x1ea   : > { %v1783_v53 = vmax.f32 %v1775_v50, %v538_v52 }
 0x1ec   : > { %v550_v55 = vsub.f32 %v1775_v50, %v1783_v53  ;;  %852 = vst.msk [vmem:[#allocation2 + $0x8] sm:$0xff] %vm305_vm2, %v1783_v53  ;;  %568 = vperm.xlu1 %1240, %v1783_v53   ;;  %v595_v50 = vld [vmem:[#allocation3 + $0x10] sm:$0xff] }
 0x1ed   : > { %v541_v56 = vpop.xlane.xlu1 %540 }
 0x1ee   : > { %v1793_v57 = vmax.f32 %v1785_v54, %v541_v56  ;;  %v555_v34 = vmul.f32 1.442695, %v550_v55 }
 0x1f0   : > { %v551_v59 = vsub.f32 %v1785_v54, %v1793_v57  ;;  %853 = vst.msk [vmem:[#allocation2 + $0x10] sm:$0xff] %vm305_vm2, %v1793_v57  ;;  %573 = vperm.xlu1 %1240, %v1793_v57   ;;  %v596_v54 = vld [vmem:[#allocation3 + $0x18] sm:$0xff] }
 0x1f1   : > { %v544_v60 = vpop.xlane.xlu1 %543 }
 0x1f2   : > { %v1803_v61 = vmax.f32 %v1795_v58, %v544_v60 }
 0x1f4   : > { %v552_v1 = vsub.f32 %v1795_v58, %v1803_v61  ;;  %854 = vst.msk [vmem:[#allocation2 + $0x18] sm:$0xff] %vm305_vm2, %v1803_v61  ;;  %578 = vperm.xlu1 %1240, %v1803_v61  }
 0x1f6   : > { %v559_v38 = vmul.f32 1.442695, %v552_v1 }
 0x267   : > { %v564_v12 = vpop.permute.xlu0 %563 }
 0x268   : > { %v581_v13 = vsub.f32 %v1754_v26, %v564_v12 }
 0x26a   : > { %v585_v14 = vmul.f32 1.442695, %v581_v13 }
 0x26b   : > { %v569_v15 = vpop.permute.xlu1 %568 }
 0x26c   : > { %1241 = vpow2.f32 %v585_v14  ;;  %v582_v16 = vsub.f32 %v1756_v27, %v569_v15 }
 0x26e   : > { %v587_v17 = vmul.f32 1.442695, %v582_v16  ;;  %v622_v16 = vld [vmem:[#allocation4] sm:$0xff] }
 0x26f   : > { %v574_v18 = vpop.permute.xlu1 %573 }
 0x270   : > { %1243 = vpow2.f32 %v587_v17  ;;  %v583_v19 = vsub.f32 %v1762_v36, %v574_v18 }
 0x272   : > { %v589_v20 = vmul.f32 1.442695, %v583_v19  ;;  %v623_v19 = vld [vmem:[#allocation4 + $0x8] sm:$0xff] }
 0x273   : > { %v579_v21 = vpop.permute.xlu1 %578 }
 0x274   : > { %1245 = vpow2.f32 %v589_v20  ;;  %v584_v22 = vsub.f32 %v1764_v37, %v579_v21  ;;  %v557_v37 = vmul.f32 1.442695, %v551_v59 }
 0x276   : > { %v1242_v23 = vpop.eup %1241  ;;  %v591_v24 = vmul.f32 1.442695, %v584_v22 }
 0x277   : > { %v601_v25 = vsel %vm532_vm3, %v1242_v23, 0.0  ;;  %v650_v26 = vpack.c.bf16 %v1242_v23, %v1242_v23 }
 0x278   : > { %1247 = vpow2.f32 %v591_v24  ;;  %602 = vadd.xlane.f32.xlu1 %v601_v25 }
 0x279   : > { %1138 = vmatmul.mubr.msk.bf16.vlgmr.msra.gmra.mrb[8].mxu0 %vm532_vm3, %v650_v26  ;;  %1249 = vpow2.f32 %v555_v34 }
 0x27a   : > { %v1244_v27 = vpop.eup %1243  ;;  %1148 = vmatpush3.bf16.msra.mxu0 %v755_v8  ;;  %1149 = vmatprep.mubr.msk.bf16.mxu0 %vm1449_vm1, %v1448_v0 }
 0x27b   : > { %v604_v28 = vsel %vm532_vm3, %v1244_v27, 0.0  ;;  %v651_v29 = vpack.c.bf16 %v1244_v27, %v1244_v27 }
 0x27c   : > { %605 = vadd.xlane.f32.xlu0 %v604_v28  ;;  %v624_v28 = vld [vmem:[#allocation4 + $0x10] sm:$0xff] }
 0x27d   : > { %1144 = vmatmul.mubr.msk.bf16.vlgmr.msra.gmra.mrb[8].mxu1 %vm532_vm3, %v651_v29 }
 0x27e   : > { %v1246_v30 = vpop.eup %1245  ;;  %1154 = vmatpush3.bf16.msra.mxu1 %v801_v11  ;;  %1155 = vmatprep.mubr.msk.bf16.mxu1 %vm1449_vm1, %v1448_v0  ;;  %v553_v0 = vmul.f32 1.442695, %v549_v51 }
 0x27f   : > { %v607_v31 = vsel %vm532_vm3, %v1246_v30, 0.0  ;;  %v652_v32 = vpack.c.bf16 %v1246_v30, %v1246_v30 }
 0x280   : > { %608 = vadd.xlane.f32.xlu1 %v607_v31  ;;  %1251 = vpow2.f32 %v553_v0 }
 0x281   : > { %1150 = vmatmul.mubr.msk.bf16.vlgmr.msra.gmra.mrb[12].mxu0 %vm532_vm3, %v652_v32  ;;  %1253 = vpow2.f32 %v557_v37 }
 0x282   : > { %v1248_v33 = vpop.eup %1247  ;;  %1255 = vpow2.f32 %v559_v38 }
 0x283   : > { %v610_v35 = vsel %vm532_vm3, %v1248_v33, 0.0  ;;  %v653_v36 = vpack.c.bf16 %v1248_v33, %v1248_v33  ;;  %v1250_v39 = vpop.eup %1249 }
 0x284   : > { %611 = vadd.xlane.f32.xlu1 %v610_v35  ;;  %v598_v48 = vmul.f32 %v1250_v39, %v594_v46  ;;  %v625_v35 = vld [vmem:[#allocation4 + $0x18] sm:$0xff] }
 0x285   : > { %1156 = vmatmul.mubr.msk.bf16.vlgmr.msra.gmra.mrb[12].mxu1 %vm532_vm3, %v653_v36 }
 0x28a   : > { %v1252_v40 = vpop.eup %1251 }
 0x28b   : > { %v1254_v41 = vpop.eup %1253  ;;  %v597_v44 = vmul.f32 %v1252_v40, %v593_v43 }
 0x28c   : > { %v1256_v42 = vpop.eup %1255  ;;  %v599_v52 = vmul.f32 %v1254_v41, %v595_v50 }
 0x28d   : > { %v600_v57 = vmul.f32 %v1256_v42, %v596_v54 }
 0x292   : > { %633 = vperm.xlu0 %1239, %v1250_v39  }
 0x295   : > { %628 = vperm.xlu1 %1240, %v1252_v40  }
 0x299   : > { %638 = vperm.xlu1 %1240, %v1254_v41  }
 0x29d   : > { %643 = vperm.xlu1 %1240, %v1256_v42  }
 0x305   : > { %v603_v45 = vpop.xlane.xlu1 %602 }
 0x306   : > { %v613_v47 = vadd.f32 %v603_v45, %v597_v44 }
 0x308   : > { %618 = vst.msk [vmem:[#allocation3] sm:$0xff] %vm305_vm2, %v613_v47 }
 0x309   : > { %v606_v49 = vpop.xlane.xlu0 %605 }
 0x30a   : > { %v614_v51 = vadd.f32 %v606_v49, %v598_v48 }
 0x30c   : > { %619 = vst.msk [vmem:[#allocation3 + $0x8] sm:$0xff] %vm305_vm2, %v614_v51 }
 0x30d   : > { %v609_v53 = vpop.xlane.xlu1 %608 }
 0x30e   : > { %v615_v55 = vadd.f32 %v609_v53, %v599_v52 }
 0x30f   : > { %v858_v56 = vld [vmem:[#allocation3] sm:$0xff] }
 0x310   : > { %620 = vst.msk [vmem:[#allocation3 + $0x10] sm:$0xff] %vm305_vm2, %v615_v55  ;;  %1257 = vrcp.f32 %v858_v56 }
 0x311   : > { %v612_v58 = vpop.xlane.xlu1 %611  ;;  %v634_v20 = vpop.permute.xlu0 %633 }
 0x312   : > { %v616_v59 = vadd.f32 %v612_v58, %v600_v57  ;;  %v647_v26 = vmul.f32 %v634_v20, %v623_v19 }
 0x313   : > { %v859_v60 = vld [vmem:[#allocation3 + $0x8] sm:$0xff] }
 0x314   : > { %621 = vst.msk [vmem:[#allocation3 + $0x18] sm:$0xff] %vm305_vm2, %v616_v59  ;;  %1259 = vrcp.f32 %v859_v60 }
 0x315   : > { %v629_v17 = vpop.permute.xlu1 %628 }
 0x316   : > { %v646_v18 = vmul.f32 %v629_v17, %v622_v16 }
 0x317   : > { %v860_v61 = vld [vmem:[#allocation3 + $0x10] sm:$0xff] }
 0x318   : > { %1261 = vrcp.f32 %v860_v61 }
 0x319   : > { %v639_v24 = vpop.permute.xlu1 %638 }
 0x31a   : > { %v1258_v62 = vpop.eup %1257  ;;  %v648_v33 = vmul.f32 %v639_v24, %v624_v28 }
 0x31b   : > { %v866_v63 = vmul.f32 %v1258_v62, %v858_v56  ;;  %v861_v1 = vld [vmem:[#allocation3 + $0x18] sm:$0xff] }
 0x31c   : > { %1263 = vrcp.f32 %v861_v1 }
 0x31d   : > { %v870_v2 = vsub.f32 2.0, %v866_v63  ;;  %v644_v36 = vpop.permute.xlu1 %643 }
 0x31e   : > { %v1260_v3 = vpop.eup %1259  ;;  %v649_v40 = vmul.f32 %v644_v36, %v625_v35 }
 0x31f   : > { %v874_v4 = vmul.f32 %v1258_v62, %v870_v2  ;;  %v867_v5 = vmul.f32 %v1260_v3, %v859_v60 }
 0x321   : > { %884 = vperm.xlu1 %1240, %v874_v4   ;;  %v871_v6 = vsub.f32 2.0, %v867_v5 }
 0x322   : > { %v1262_v7 = vpop.eup %1261 }
 0x323   : > { %v875_v8 = vmul.f32 %v1260_v3, %v871_v6  ;;  %v868_v9 = vmul.f32 %v1262_v7, %v860_v61 }
 0x325   : > { %889 = vperm.xlu0 %1239, %v875_v8   ;;  %v872_v10 = vsub.f32 2.0, %v868_v9 }
 0x326   : > { %v1264_v11 = vpop.eup %1263 }
 0x327   : > { %v876_v12 = vmul.f32 %v1262_v7, %v872_v10  ;;  %v869_v13 = vmul.f32 %v1264_v11, %v861_v1 }
 0x329   : > { %894 = vperm.xlu1 %1240, %v876_v12   ;;  %v873_v14 = vsub.f32 2.0, %v869_v13 }
 0x32b   : > { %v877_v15 = vmul.f32 %v1264_v11, %v873_v14 }
 0x32d   : > { %899 = vperm.xlu0 %1239, %v877_v15  }
 0x34c   : > { %v699_v21 = vpop.f32.mrb[8].mxu0 }
 0x34d   : > { %v843_v22 = vadd.f32 %v699_v21, %v646_v18  ;;  %v1139_v23 = vpop.f32.mrb[9].mxu0 }
 0x34e   : > { %v702_v25 = vpop.f32.mrb[10].mxu0 }
 0x34f   : > { %847 = vst.msk [vmem:[#allocation4] sm:$0xff] %vm314_vm0, %v843_v22  ;;  %v1140_v27 = vpop.f32.mrb[11].mxu0 }
 0x350   : > { %v745_v29 = vpop.f32.mrb[8].mxu1 }
 0x351   : > { %v844_v30 = vadd.f32 %v745_v29, %v647_v26  ;;  %v1145_v31 = vpop.f32.mrb[9].mxu1 }
 0x352   : > { %v748_v32 = vpop.f32.mrb[10].mxu1 }
 0x353   : > { %848 = vst.msk [vmem:[#allocation4 + $0x8] sm:$0xff] %vm314_vm0, %v844_v30  ;;  %v1146_v34 = vpop.f32.mrb[11].mxu1 }
 0x354   : > { %v791_v0 = vpop.f32.mrb[12].mxu0 }
 0x355   : > { %v845_v37 = vadd.f32 %v791_v0, %v648_v33  ;;  %v1151_v38 = vpop.f32.mrb[13].mxu0 }
 0x356   : > { %v794_v39 = vpop.f32.mrb[14].mxu0  ;;  %v878_v47 = vld [vmem:[#allocation4] sm:$0xff] }
 0x357   : > { %849 = vst.msk [vmem:[#allocation4 + $0x10] sm:$0xff] %vm314_vm0, %v845_v37  ;;  %v1152_v41 = vpop.f32.mrb[15].mxu0 }
 0x358   : > { %v837_v42 = vpop.f32.mrb[12].mxu1 }
 0x359   : > { %v846_v43 = vadd.f32 %v837_v42, %v649_v40  ;;  %v1157_v44 = vpop.f32.mrb[13].mxu1 }
 0x35a   : > { %v840_v45 = vpop.f32.mrb[14].mxu1  ;;  %v879_v50 = vld [vmem:[#allocation4 + $0x8] sm:$0xff] }
 0x35b   : > { %850 = vst.msk [vmem:[#allocation4 + $0x18] sm:$0xff] %vm314_vm0, %v846_v43  ;;  %v1158_v46 = vpop.f32.mrb[15].mxu1 }
 0x35e   : > { %v880_v53 = vld [vmem:[#allocation4 + $0x10] sm:$0xff] }
 0x362   : > { %v881_v57 = vld [vmem:[#allocation4 + $0x18] sm:$0xff] }
 0x3a0   : > { %v885_v48 = vpop.permute.xlu1 %884 }
 0x3a1   : > { %v902_v49 = vmul.f32 %v885_v48, %v878_v47 }
 0x3a3   : > { %906 = vst.msk [vmem:[%s295_s24] sm:$0xff] %vm314_vm0, %v902_v49 }
 0x3a4   : > { %v890_v51 = vpop.permute.xlu0 %889 }
 0x3a5   : > { %v903_v52 = vmul.f32 %v890_v51, %v879_v50 }
 0x3a7   : > { %907 = vst.msk [vmem:[%s295_s24 + $0x8] sm:$0xff] %vm314_vm0, %v903_v52 }
 0x3a8   : > { %v895_v54 = vpop.permute.xlu1 %894 }
 0x3a9   : > { %v904_v55 = vmul.f32 %v895_v54, %v880_v53 }
 0x3ab   : > { %908 = vst.msk [vmem:[%s295_s24 + $0x10] sm:$0xff] %vm314_vm0, %v904_v55 }
 0x3ac   : > { %v900_v56 = vpop.permute.xlu0 %899 }
 0x3ad   : > { %v905_v58 = vmul.f32 %v900_v56, %v881_v57 }
 0x3af   : > { %909 = vst.msk [vmem:[%s295_s24 + $0x18] sm:$0xff] %vm314_vm0, %v905_v58 }
 0x3b0   : > { %1368 = shalt.err (!%p1365_p13)
}
 0x3b1   : > { %s1369_s28 = scalar_lea.hbm %s1859_s30, 512  ;;  %s1373_s10 = scalar_lea.hbm %s1912_s3, 1024 }
 0x3b2   : > { %p1370_p11 = scmp.ne.s32.totalorder %s1859_s30, %s1369_s28  ;;  %p1374_p7 = scmp.lt.u32.totalorder %s1859_s30, %s1912_s3 }
 0x3b3   : > { %p1375_p4 = scmp.lt.u32.totalorder %s1373_s10, %s1369_s28  ;;  %p1377_p0 = scmp.lt.u32.totalorder %s1369_s28, %s1859_s30 }
 0x3b4   : > { %p1371_p2 = pnand %p1370_p11, %p1941_p10 }
 0x3b5   : > { %p1376_p3 = por %p1375_p4, %p1374_p7 }
 0x3b6   : > { %p1372_p5 = pneg %p1371_p2 }
 0x3b7   : > { %p1378_p8 = por %p1377_p0, %p1376_p3 }
 0x3b9   : > { %p1379_p9 = pnand %p1378_p8, %p1372_p5 }
 0x3bb   : > { %1382 = shalt.err (!%p1379_p9)
}
 0x3bc   : > { %s1453_s11 = smov 128   ;;  %s1454_s19 = smov 8  }
 0x3bd   : > { %1165 = dma.vmem_to_hbm [thread:$0]  (%p1941_p10), %s1853_s16, 512, %s1859_s30, %s911_s6, %s1453_s11, %s1453_s11, %s1454_s19  }
 0x3be PF: > { %s940_s9 = sand.u32 1, %s1421_s12   ;;  %p1942_p12 = scmp.ne.s32.totalorder %s1929_s27, 0 }
 0x3bf   : > { %p1943_p1 = scmp.ge.s32.totalorder %s1441_s17, 2  ;;  %s941_s18 = scalar_lea.sflag [#allocation7], %s940_s9 }
 0x3c1   : > { %p1178_p6 = pnand %p1943_p1, %p1942_p12 }
 0x3c3   : > { %1416 = dma.done.wait (!%p1178_p6), %s941_s18, 512  }
 0x3c4   : > { %1418 = vsyncadd (!%p1178_p6), %s941_s18, 4294966784  ;;  %s22_s17 = sadd.s32 1, %s1441_s17   ;;  %s1944_s24 = sld [smem:[#allocation17_spill]] }
 0x3c5   : > { %p19_p13 = scmp.ge.s32.totalorder %s22_s17, 4   ;;  %s1945_s15 = sld [smem:[#allocation15_spill]] }
 0x3c6   : > { %s1946_s16 = sld [smem:[#allocation16_spill]]  ;;  %s1947_s12 = smov %s1425_s13 }
 0x3c7   : > { %s1948_s13 = smov %s1429_s14  ;;  %21 = sbr.rel (!%p19_p13) target bundleno = 10 (0xa), region = 109 }
 0x3ca   : > { %s1949_s14 = smov %s1944_s24 }
 0x3ce   :  { %946 = vsyncpa [#allocation6], 1 }
 0x3cf   :  { %948 = vsyncpa [#allocation6 + $0x1], 1 }
 0x3d0   :  { %949 = vsyncpa [#allocation9], 1 }
 0x3d1   :  { %951 = vsyncpa [#allocation9 + $0x1], 1 }
 0x3d2   :  { %952 = vsyncpa [#allocation7], 1 }
 0x3d3   :  { %954 = vsyncpa [#allocation7 + $0x1], 1 }

</bundles_post_ra>
